<compile_context>
chip_gen: v7x
topology: tpu7x:2x2x1
jax: 0.10.0
libtpu: 0.0.40
codegen_flags: <defaults>
</compile_context>

<pallas_src>
import functools

import jax
import jax.numpy as jnp
from jax.experimental import pallas as pl
from jax.experimental.pallas import tpu as pltpu


def _tv_kernel(x_ref, hpart_ref, wpart_ref, *, n_planes, tbc, h, w):
    """Per-block partial sums of squared vertical / horizontal differences.

    x_ref     : VMEM block (tbc, h*w) -- tbc flattened image planes.
    hpart_ref : (1, 8, 128) f32 -- this block's sum of (x[r+1, :] - x[r, :])**2
    wpart_ref : (1, 8, 128) f32 -- this block's sum of (x[:, c+1] - x[:, c])**2
    The per-block scalar is broadcast across the whole tile so the store is a
    full, unmasked lane-dense vst; the wrapper reads element [:, 0, 0].
    """
    hw = h * w
    x = x_ref[...]

    # Mask planes past the real B*C count in the (possibly ragged) last block.
    # Diffs never cross the plane axis, so zeroed rows contribute exactly 0.
    if n_planes % tbc != 0:
        plane = (jax.lax.broadcasted_iota(jnp.int32, (tbc, 1), 0)
                 + pl.program_id(0) * tbc)
        x = jnp.where(plane < n_planes, x, jnp.zeros_like(x))

    # Vertical neighbours: flat indices j and j + w are rows (r, r+1) of the
    # same plane for every j < (h-1)*w, so no extra mask is needed.
    if h > 1:
        dh = (x[:, w:] - x[:, : hw - w]).astype(jnp.float32)
        h_sum = jnp.sum(dh * dh)
    else:
        h_sum = jnp.float32(0.0)

    # Horizontal neighbours: flat indices j and j + 1, except at row ends
    # (j % w == w - 1), which are masked out.
    if w > 1:
        dw = (x[:, 1:] - x[:, : hw - 1]).astype(jnp.float32)
        col = jax.lax.broadcasted_iota(jnp.int32, (1, hw - 1), 1)
        dw = jnp.where((col % w) != (w - 1), dw, 0.0)
        w_sum = jnp.sum(dw * dw)
    else:
        w_sum = jnp.float32(0.0)

    hpart_ref[...] = jnp.full((1, 8, 128), h_sum, jnp.float32)
    wpart_ref[...] = jnp.full((1, 8, 128), w_sum, jnp.float32)


def tv_loss(x, tv_loss_weight: float = 1.0):
    """Total variation loss, matching the PyTorch TVLoss.forward semantics.

    x: [B, C, H, W]; returns a scalar float32.
    """
    b, c, h, w = x.shape
    n = b * c
    hw = h * w
    itemsize = jnp.dtype(x.dtype).itemsize

    # Lane-dense view: one flattened plane per row (layout plumbing only).
    y = x.reshape(n, hw)

    # Batch planes per grid step so each input block is ~4 MiB (near the HBM
    # roofline); with double buffering this stays well inside v5e's 16 MiB
    # scoped-VMEM default and v7x's 64 MiB physical VMEM.
    target_block_bytes = 4 << 20
    plane_bytes = max(1, hw * itemsize)
    tbc = max(1, target_block_bytes // plane_bytes)
    tbc = min(tbc, n)
    if tbc < n and tbc >= 8:
        tbc = (tbc // 8) * 8  # sublane-friendly block when splitting the planes
    # NOTE: for very large single planes (> 4 MiB each) tbc drops below 8 and
    # Mosaic pads the sublane dim of the block; not hit by typical TV inputs.
    num_blocks = pl.cdiv(n, tbc)

    kernel = functools.partial(_tv_kernel, n_planes=n, tbc=tbc, h=h, w=w)

    h_parts, w_parts = pl.pallas_call(
        kernel,
        out_shape=(
            jax.ShapeDtypeStruct((num_blocks, 8, 128), jnp.float32),
            jax.ShapeDtypeStruct((num_blocks, 8, 128), jnp.float32),
        ),
        grid_spec=pltpu.PrefetchScalarGridSpec(
            num_scalar_prefetch=0,
            grid=(num_blocks,),
            in_specs=[pl.BlockSpec((tbc, hw), lambda i: (i, 0))],
            out_specs=(
                pl.BlockSpec((1, 8, 128), lambda i: (i, 0, 0)),
                pl.BlockSpec((1, 8, 128), lambda i: (i, 0, 0)),
            ),
        ),
        compiler_params=pltpu.CompilerParams(
            # Per-block partial outputs -> no carried state -> the plane axis
            # can be sharded across v7x's two TensorCores.
            dimension_semantics=("parallel",),
            vmem_limit_bytes=32 << 20,
        ),
        cost_estimate=pl.CostEstimate(
            flops=4 * n * hw,
            transcendentals=0,
            bytes_accessed=n * hw * itemsize + 2 * num_blocks * 8 * 128 * 4,
        ),
    )(y)

    h_tv = jnp.sum(h_parts[:, 0, 0])
    w_tv = jnp.sum(w_parts[:, 0, 0])

    # Same normalization as the PyTorch module (divides by zero when h == 1 or
    # w == 1, mirroring the reference behavior).
    count_h = c * (h - 1) * w
    count_w = c * h * (w - 1)
    return tv_loss_weight * 2.0 * (h_tv / count_h + w_tv / count_w) / b


def tv_loss_ref(x, tv_loss_weight: float = 1.0):
    """Pure-JAX reference (mirrors the PyTorch code)."""
    x = x.astype(jnp.float32)
    b, c, h, w = x.shape
    count_h = c * (h - 1) * w
    count_w = c * h * (w - 1)
    h_tv = jnp.sum((x[:, :, 1:, :] - x[:, :, : h - 1, :]) ** 2)
    w_tv = jnp.sum((x[:, :, :, 1:] - x[:, :, :, : w - 1]) ** 2)
    return tv_loss_weight * 2.0 * (h_tv / count_h + w_tv / count_w) / b


if __name__ == "__main__":
    key = jax.random.PRNGKey(0)
    x = jax.random.normal(key, (2, 4, 16, 16), dtype=jnp.float32)

    out = jax.block_until_ready(tv_loss(x, tv_loss_weight=1.0))
    ref = jax.block_until_ready(tv_loss_ref(x, tv_loss_weight=1.0))

    assert jnp.allclose(out, ref, rtol=1e-5, atol=1e-5), (out, ref)
    print("KERNEL_OK")
</pallas_src>

<mosaic_0001>
module attributes {stable_mosaic.version = 11 : i64} {
  func.func @_tv_kernel(%arg0: i32, %arg1: memref<8x256xf32, #tpu.memory_space<vmem>>, %arg2: memref<1x8x128xf32, #tpu.memory_space<vmem>>, %arg3: memref<1x8x128xf32, #tpu.memory_space<vmem>>) attributes {dimension_semantics = [#tpu.dimension_semantics<parallel>], iteration_bounds = array<i64: 1>, scalar_prefetch = 0 : i64, scratch_operands = 0 : i64, tpu.core_type = #tpu.core_type<tc>, window_params = [{transform_indices = @transform_0, window_bounds = array<i64: 8, 256>}, {transform_indices = @transform_1, window_bounds = array<i64: 1, 8, 128>}, {transform_indices = @transform_2, window_bounds = array<i64: 1, 8, 128>}]} {
    %c0 = arith.constant 0 : index
    %c0_0 = arith.constant 0 : index
    %0 = vector.load %arg1[%c0, %c0_0] : memref<8x256xf32, #tpu.memory_space<vmem>>, vector<8x256xf32>
    %1 = vector.extract_strided_slice %0 {offsets = [0, 16], sizes = [8, 240], strides = [1, 1]} : vector<8x256xf32> to vector<8x240xf32>
    %2 = vector.extract_strided_slice %0 {offsets = [0, 0], sizes = [8, 240], strides = [1, 1]} : vector<8x256xf32> to vector<8x240xf32>
    %3 = arith.subf %1, %2 : vector<8x240xf32>
    %4 = arith.mulf %3, %3 : vector<8x240xf32>
    %5 = vector.shape_cast %4 : vector<8x240xf32> to vector<1x8x240xf32>
    %cst = arith.constant dense<0.000000e+00> : vector<1xf32>
    %6 = vector.multi_reduction <add>, %5, %cst [1, 2] : vector<1x8x240xf32> to vector<1xf32>
    %7 = vector.shape_cast %6 : vector<1xf32> to vector<1x1x1xf32>
    %8 = vector.extract %7[0, 0, 0] : f32 from vector<1x1x1xf32>
    %9 = vector.extract_strided_slice %0 {offsets = [0, 1], sizes = [8, 255], strides = [1, 1]} : vector<8x256xf32> to vector<8x255xf32>
    %10 = vector.extract_strided_slice %0 {offsets = [0, 0], sizes = [8, 255], strides = [1, 1]} : vector<8x256xf32> to vector<8x255xf32>
    %11 = arith.subf %9, %10 : vector<8x255xf32>
    %12 = tpu.iota {dimensions = array<i32: 1>} : vector<1x255xi32>
    %c16_i32 = arith.constant 16 : i32
    %c0_i32 = arith.constant 0 : i32
    %13 = arith.cmpi eq, %c16_i32, %c0_i32 : i32
    %c1_i32 = arith.constant 1 : i32
    %14 = arith.select %13, %c1_i32, %c16_i32 : i32
    %15 = vector.broadcast %14 : i32 to vector<1x255xi32>
    %16 = arith.remsi %12, %15 : vector<1x255xi32>
    %c0_i32_1 = arith.constant 0 : i32
    %17 = vector.broadcast %c0_i32_1 : i32 to vector<1x255xi32>
    %18 = arith.cmpi ne, %16, %17 : vector<1x255xi32>
    %c0_i32_2 = arith.constant 0 : i32
    %19 = vector.broadcast %c0_i32_2 : i32 to vector<1x255xi32>
    %20 = arith.cmpi slt, %16, %19 : vector<1x255xi32>
    %c0_i32_3 = arith.constant 0 : i32
    %21 = arith.cmpi slt, %14, %c0_i32_3 : i32
    %22 = vector.broadcast %21 : i1 to vector<1x255xi1>
    %23 = vector.broadcast %22 : vector<1x255xi1> to vector<1x255xi1>
    %24 = arith.xori %20, %23 : vector<1x255xi1>
    %25 = arith.andi %24, %18 : vector<1x255xi1>
    %26 = vector.broadcast %14 : i32 to vector<1x255xi32>
    %27 = arith.addi %16, %26 : vector<1x255xi32>
    %28 = arith.select %25, %27, %16 : vector<1x255xi1>, vector<1x255xi32>
    %c15_i32 = arith.constant 15 : i32
    %29 = vector.broadcast %c15_i32 : i32 to vector<1x255xi32>
    %30 = arith.cmpi ne, %28, %29 : vector<1x255xi32>
    %cst_4 = arith.constant 0.000000e+00 : f32
    %31 = vector.shape_cast %30 : vector<1x255xi1> to vector<1x255xi1>
    %32 = vector.broadcast %31 : vector<1x255xi1> to vector<8x255xi1>
    %33 = vector.broadcast %cst_4 : f32 to vector<8x255xf32>
    %34 = arith.select %32, %11, %33 : vector<8x255xi1>, vector<8x255xf32>
    %35 = arith.mulf %34, %34 : vector<8x255xf32>
    %36 = vector.shape_cast %35 : vector<8x255xf32> to vector<1x8x255xf32>
    %cst_5 = arith.constant dense<0.000000e+00> : vector<1xf32>
    %37 = vector.multi_reduction <add>, %36, %cst_5 [1, 2] : vector<1x8x255xf32> to vector<1xf32>
    %38 = vector.shape_cast %37 : vector<1xf32> to vector<1x1x1xf32>
    %39 = vector.extract %38[0, 0, 0] : f32 from vector<1x1x1xf32>
    %40 = vector.broadcast %8 : f32 to vector<1x8x128xf32>
    %c0_6 = arith.constant 0 : index
    %c0_7 = arith.constant 0 : index
    %c0_8 = arith.constant 0 : index
    %41 = vector.load %arg2[%c0_6, %c0_7, %c0_8] : memref<1x8x128xf32, #tpu.memory_space<vmem>>, vector<1x8x128xf32>
    tpu.vector_store %arg2[%c0_6, %c0_7, %c0_8], %40 {strides = array<i32>} : memref<1x8x128xf32, #tpu.memory_space<vmem>>, vector<1x8x128xf32>,
    %42 = vector.broadcast %39 : f32 to vector<1x8x128xf32>
    %c0_9 = arith.constant 0 : index
    %c0_10 = arith.constant 0 : index
    %c0_11 = arith.constant 0 : index
    %43 = vector.load %arg3[%c0_9, %c0_10, %c0_11] : memref<1x8x128xf32, #tpu.memory_space<vmem>>, vector<1x8x128xf32>
    tpu.vector_store %arg3[%c0_9, %c0_10, %c0_11], %42 {strides = array<i32>} : memref<1x8x128xf32, #tpu.memory_space<vmem>>, vector<1x8x128xf32>,
    return
  }
  func.func @transform_0(%arg0: i32) -> (i32, i32) {
    %c0_i32 = arith.constant 0 : i32
    %c0_i32_0 = arith.constant 0 : i32
    return %arg0, %c0_i32 : i32, i32
  }
  func.func @transform_1(%arg0: i32) -> (i32, i32, i32) {
    %c0_i32 = arith.constant 0 : i32
    %c0_i32_0 = arith.constant 0 : i32
    %c0_i32_1 = arith.constant 0 : i32
    return %arg0, %c0_i32, %c0_i32_0 : i32, i32, i32
  }
  func.func @transform_2(%arg0: i32) -> (i32, i32, i32) {
    %c0_i32 = arith.constant 0 : i32
    %c0_i32_0 = arith.constant 0 : i32
    %c0_i32_1 = arith.constant 0 : i32
    return %arg0, %c0_i32, %c0_i32_0 : i32, i32, i32
  }
}

</mosaic_0001>

<bundles_post_ra>
// kernel: tpu_custom_call.1
= control target key start
LH: loop header
LB: loop body
LE: loop exit
PB: predicated region body
PF: predicated region fallthrough
CT: control target
= control target key end

     0   :  { %8 = vsyncpa [#allocation3], 0  ;;  %s310_s0 = inlined_call_operand.hbm [shape: f32[8,256], index: 0, kind: input, shape index: {}]   ;;  %s311_s1 = inlined_call_operand.hbm [shape: f32[1,8,128], index: 1, kind: output, shape index: {0}]   ;;  %s312_s2 = inlined_call_operand.hbm [shape: f32[1,8,128], index: 2, kind: output, shape index: {1}]  }
   0x1   :  { %9 = vsyncpa [#allocation4], 0 }
   0x2   :  { %10 = vsyncpa [#allocation7], 0  ;;  %s245_s9 = smov [#allocation2]   ;;  %s173_s13 = scalar_lea.hbm %s310_s0, 256 }
   0x3   :  { %s17_s10 = sshll.u32 %s245_s9, 4  ;;  %p174_p0 = scmp.ne.s32.totalorder %s310_s0, %s173_s13  ;;  %s18_s10 = int_to_ptr.vmem [resolvable:$true] %s17_s10 }
   0x4   :  { %p177_p1 = scmp.lt.u32.totalorder %s173_s13, %s310_s0 }
   0x6   :  { %p179_p2 = pnand %p177_p1, %p174_p0 }
   0x8   :  { %182 = shalt.err (!%p179_p2)
}
   0x9   :  { %s183_s18 = scalar_lea.vmem %s18_s10, 256  ;;  %p188_p4 = scmp.lt.s32.totalorder %s18_s10, %s18_s10 }
   0xa   :  { %p184_p3 = scmp.ne.s32.totalorder %s18_s10, %s183_s18  ;;  %p189_p5 = scmp.lt.s32.totalorder %s183_s18, %s183_s18 }
   0xc   :  { %p190_p6 = por %p189_p5, %p188_p4 }
   0xe   :  { %p191_p7 = pnand %p190_p6, %p184_p3 }
  0x10   :  { %194 = shalt.err (!%p191_p7)
}
  0x11   :  { %20 = dma.hbm_to_vmem [thread:$0]  %s310_s0, 256, %s18_s10, [#allocation3]  }
  0x12   :  { %239 = dma.done.wait [#allocation3], 256  }
  0x13   :  { %240 = vsyncadd [#allocation3], 4294967040  ;;  %v24_v0 = vld [vmem:[#allocation2] sm:$0xff]  ;;  %s246_s21 = smov 16   ;;  %s247_s22 = smov 1   ;;  %v25_v1 = vld [vmem:[#allocation2 + $0x8] sm:$0xff]  ;;  %v71_v14 = vlaneseq }
  0x14   :  { %28 = vrot.lane.b32.xlu1 %v24_v0, %s246_s21  ;;  %61 = vrot.lane.b32.xlu0 %v24_v0, %s247_s22  ;;  %vm32_vm0 = vcmask 130048   ;;  %vm65_vm1 = vcmask 7168   ;;  %s248_s23 = smov 127   ;;  %s249_s0 = smov 112   ;;  %vm110_vm3 = vcmask 1039360   ;;  %vm46_vm5 = vcmask 916480  }
  0x15   :  { %v72_v15 = vand.u32 127, %v71_v14  ;;  %s250_s24 = smov [#allocation5]   ;;  %s251_s26 = smov [#allocation6]  }
  0x16   :  { %s139_s25 = sshll.u32 %s250_s24, 4  ;;  %s149_s27 = sshll.u32 %s251_s26, 4  ;;  %s140_s25 = int_to_ptr.vmem [resolvable:$true] %s139_s25  ;;  %s279_s27 = int_to_ptr.vmem [resolvable:$true] %s149_s27 }
  0x17   :  { %v73_v16 = vadd.s32 128, %v72_v15  ;;  %v78_v18 = vand.u32 15, %v72_v15  ;;  %s195_s30 = scalar_lea.vmem %s140_s25, 128  ;;  %p200_p9 = scmp.lt.s32.totalorder %s140_s25, %s140_s25 }
  0x18   :  { %30 = vrot.lane.b32.xlu1 %v25_v1, %s246_s21  ;;  %63 = vrot.lane.b32.xlu0 %v25_v1, %s247_s22  ;;  %p196_p8 = scmp.ne.s32.totalorder %s140_s25, %s195_s30  ;;  %p201_p10 = scmp.lt.s32.totalorder %s195_s30, %s195_s30 }
  0x19   :  { %v85_v17 = vand.u32 15, %v73_v16  ;;  %vm98_vm4 = vcmp.ne.s32.totalorder %v78_v18, 15 }
  0x1a   :  { %p202_p11 = por %p201_p10, %p200_p9 }
  0x1b   :  { %vm99_vm2 = vcmp.ne.s32.totalorder %v85_v17, 15 }
  0x1c   :  { %p203_p12 = pnand %p202_p11, %p196_p8 }
  0x86   :  { %v29_v2 = vpop.permute.xlu1 %28  ;;  %v62_v3 = vpop.permute.xlu0 %61 }
  0x87   :  { %v36_v4 = vsub.f32 %v24_v0, %v29_v2  ;;  %v69_v5 = vsub.f32 %v24_v0, %v62_v3 }
  0x89   :  { %v38_v6 = vmul.f32 %v36_v4, %v36_v4  ;;  %106 = vrot.lane.b32.xlu0 %v69_v5, %s248_s23 }
  0x8a   :  { %v31_v7 = vpop.permute.xlu1 %30  ;;  %v64_v8 = vpop.permute.xlu0 %63 }
  0x8b   :  { %v33_v9 = vsel %vm32_vm0, %v29_v2, %v31_v7  ;;  %v66_v10 = vsel %vm65_vm1, %v62_v3, %v64_v8 }
  0x8c   :  { %v37_v11 = vsub.f32 %v25_v1, %v33_v9  ;;  %v70_v12 = vsub.f32 %v25_v1, %v66_v10 }
  0x8d   :  { %42 = vrot.lane.b32.xlu0 %v38_v6, %s249_s0 }
  0x8e   :  { %108 = vrot.lane.b32.xlu1 %v70_v12, %s248_s23  ;;  %v39_v13 = vmul.f32 %v37_v11, %v37_v11 }
  0x92   :  { %44 = vrot.lane.b32.xlu1 %v39_v13, %s249_s0 }
  0xfb   :  { %v107_v19 = vpop.permute.xlu0 %106 }
  0xff   :  { %v43_v26 = vpop.permute.xlu0 %42 }
 0x100   :  { %v109_v20 = vpop.permute.xlu1 %108 }
 0x101   :  { %v111_v21 = vsel %vm110_vm3, %v107_v19, %v109_v20  ;;  %v115_v22 = vsel %vm99_vm2, %v109_v20, 0.0 }
 0x102   :  { %v114_v23 = vsel %vm98_vm4, %v111_v21, 0.0  ;;  %v117_v24 = vmul.f32 %v115_v22, %v115_v22 }
 0x103   :  { %v116_v25 = vmul.f32 %v114_v23, %v114_v23 }
 0x104   :  { %v45_v27 = vpop.permute.xlu1 %44  ;;  %v118_v28 = vsel %vm110_vm3, %v117_v24, 0.0 }
 0x105   :  { %v47_v29 = vsel %vm46_vm5, %v43_v26, %v45_v27  ;;  %v50_v30 = vsel %vm46_vm5, %v45_v27, 0.0  ;;  %v119_v31 = vadd.f32 %v118_v28, %v116_v25 }
 0x106   :  { %v51_v32 = vadd.f32 %v50_v30, %v47_v29 }
 0x107   :  { %120 = vadd.xlane.f32.xlu1 %v119_v31 }
 0x108   :  { %52 = vadd.xlane.f32.xlu0 %v51_v32 }
 0x194   :  { %v121_v33 = vpop.xlane.xlu1 %120 }
 0x195   :  { %v122_v34 = vrot.slane %v121_v33, 4  ;;  %v53_v35 = vpop.xlane.xlu0 %52 }
 0x196   :  { %v54_v36 = vrot.slane %v53_v35, 4 }
 0x197   :  { %v123_v37 = vadd.f32 %v122_v34, %v121_v33 }
 0x198   :  { %v55_v38 = vadd.f32 %v54_v36, %v53_v35 }
 0x199   :  { %v124_v39 = vrot.slane %v123_v37, 2 }
 0x19a   :  { %v56_v40 = vrot.slane %v55_v38, 2 }
 0x19b   :  { %v125_v41 = vadd.f32 %v124_v39, %v123_v37 }
 0x19c   :  { %v57_v42 = vadd.f32 %v56_v40, %v55_v38 }
 0x19d   :  { %v126_v43 = vrot.slane %v125_v41, 1 }
 0x19e   :  { %v58_v44 = vrot.slane %v57_v42, 1 }
 0x19f   :  { %v127_v45 = vadd.f32 %v126_v43, %v125_v41 }
 0x1a0   :  { %v59_v46 = vadd.f32 %v58_v44, %v57_v42 }
 0x1a2   :  { %162 = vpush %v59_v46 }
 0x1a3   :  { %164 = vpush %v127_v45 }
 0x1d3   :  { %s163_s28 = spop %162 }
 0x1d4   :  { %v129_v47 = vstv %s163_s28  ;;  %s165_s29 = spop %164 }
 0x1d5   :  { %130 = vst [vmem:[#allocation5] sm:$0xff] %v129_v47  ;;  %v131_v48 = vstv %s165_s29 }
 0x1d6   :  { %132 = vst [vmem:[#allocation6] sm:$0xff] %v131_v48 }
 0x1d7   :  { %206 = shalt.err (!%p203_p12)
}
 0x1d8   :  { %s207_s5 = scalar_lea.hbm %s311_s1, 128 }
 0x1d9   :  { %p208_p13 = scmp.ne.s32.totalorder %s311_s1, %s207_s5  ;;  %p211_p0 = scmp.lt.u32.totalorder %s207_s5, %s311_s1 }
 0x1db   :  { %p213_p1 = pnand %p211_p0, %p208_p13 }
 0x1dd   :  { %216 = shalt.err (!%p213_p1)
}
 0x1de   :  { %142 = dma.vmem_to_hbm [thread:$0]  %s140_s25, 128, %s311_s1, [#allocation4]  }
 0x1df   :  { %s217_s12 = scalar_lea.vmem %s279_s27, 128  ;;  %p222_p3 = scmp.lt.s32.totalorder %s279_s27, %s279_s27 }
 0x1e0   :  { %p218_p2 = scmp.ne.s32.totalorder %s279_s27, %s217_s12  ;;  %p223_p4 = scmp.lt.s32.totalorder %s217_s12, %s217_s12 }
 0x1e2   :  { %p224_p5 = por %p223_p4, %p222_p3 }
 0x1e4   :  { %p225_p6 = pnand %p224_p5, %p218_p2 }
 0x1e6   :  { %228 = shalt.err (!%p225_p6)
}
 0x1e7   :  { %s229_s15 = scalar_lea.hbm %s312_s2, 128 }
 0x1e8   :  { %p230_p7 = scmp.ne.s32.totalorder %s312_s2, %s229_s15  ;;  %p233_p8 = scmp.lt.u32.totalorder %s229_s15, %s312_s2 }
 0x1ea   :  { %p235_p9 = pnand %p233_p8, %p230_p7 }
 0x1ec   :  { %238 = shalt.err (!%p235_p9)
}
 0x1ed   :  { %152 = dma.vmem_to_hbm [thread:$0]  %s279_s27, 128, %s312_s2, [#allocation7]  }
 0x1ee   :  { %241 = dma.done.wait [#allocation4], 128  }
 0x1ef   :  { %242 = vsyncadd [#allocation4], 4294967168 }
 0x1f0   :  { %243 = dma.done.wait [#allocation7], 128  }
 0x1f1   :  { %244 = vsyncadd [#allocation7], 4294967168 }
 0x1f2   :  { %159 = vsyncpa [#allocation3], 1 }
 0x1f3   :  { %160 = vsyncpa [#allocation4], 1 }
 0x1f4   :  { %161 = vsyncpa [#allocation7], 1 }

</bundles_post_ra>
